<compile_context>
chip_gen: v6e
topology: v6e:2x2x1
jax: 0.10.0
libtpu: 0.0.40
codegen_flags: <defaults>
</compile_context>

<pallas_src>
import functools
import math

import jax
import jax.numpy as jnp
from jax.experimental import pallas as pl
from jax.experimental.pallas import tpu as pltpu


# ----------------------------------------------------------------------------
# Tiling helper
# ----------------------------------------------------------------------------
def _pick_tile(dim, target, aligns):
    """Largest tile <= target that divides `dim`, preferring coarser alignments
    (256 first for the v6e/v7x MXU, then 128).  Falls back to the full dim."""
    if dim <= target:
        return dim
    for align in aligns:
        t = (target // align) * align
        while t >= align:
            if dim % t == 0:
                return t
            t -= align
    return dim


_VMEM_LIMIT = 48 * 1024 * 1024   # fits v7x's 64 MiB; ample headroom on v5e/v6e


# ----------------------------------------------------------------------------
# Fused tiled linear kernel
#   y = act( LN?(x) @ w + b ) + residual?
# ----------------------------------------------------------------------------
def _fused_linear_kernel(*refs, has_bias, has_ln, has_res, activation, ln_eps,
                         multi_k):
    it = iter(refs)
    x_ref = next(it)
    w_ref = next(it)
    b_ref = next(it) if has_bias else None
    g_ref = next(it) if has_ln else None
    be_ref = next(it) if has_ln else None
    r_ref = next(it) if has_res else None
    o_ref = next(it)
    acc_ref = next(it) if multi_k else None
    xn_ref = next(it) if has_ln else None

    def epilogue(y):
        if has_bias:
            y = y + b_ref[...]
        if activation == "relu":
            y = jnp.maximum(y, 0.0)
        elif activation == "gelu":
            # exact erf GELU == torch.nn.GELU(approximate='none')
            y = 0.5 * y * (1.0 + jax.lax.erf(y * (1.0 / math.sqrt(2.0))))
        elif activation == "sigmoid":
            y = 1.0 / (1.0 + jnp.exp(-y))
        if has_res:
            y = y + r_ref[...].astype(jnp.float32)
        o_ref[...] = y.astype(o_ref.dtype)

    if has_ln:
        # LayerNorm prologue: stats in f32, result cached as bf16 for the MXU.
        # The x block depends only on the row index i, so normalize once per
        # row block (first N tile) and reuse the cached block for j > 0.
        @pl.when(pl.program_id(1) == 0)
        def _norm():
            xf = x_ref[...].astype(jnp.float32)
            mu = jnp.mean(xf, axis=-1, keepdims=True)
            xc = xf - mu
            var = jnp.mean(xc * xc, axis=-1, keepdims=True)
            xf = xc * jax.lax.rsqrt(var + ln_eps) * g_ref[...] + be_ref[...]
            xn_ref[...] = xf.astype(xn_ref.dtype)

        x = xn_ref[...]
    else:
        x = x_ref[...].astype(w_ref.dtype)

    if multi_k:
        k_idx = pl.program_id(2)

        @pl.when(k_idx == 0)
        def _init():
            acc_ref[...] = jnp.zeros_like(acc_ref)

        acc_ref[...] += jnp.dot(x, w_ref[...],
                                preferred_element_type=jnp.float32)

        @pl.when(k_idx == pl.num_programs(2) - 1)
        def _flush():
            epilogue(acc_ref[...])
    else:
        # Single K step: no f32 VMEM accumulator round trip.
        epilogue(jnp.dot(x, w_ref[...], preferred_element_type=jnp.float32))


def fused_linear(x, w, b=None, *, activation=None, residual=None,
                 ln_gamma=None, ln_beta=None, ln_eps=1e-5,
                 out_dtype=jnp.bfloat16, tm=512, tn=512, tk=512):
    """Tiled matmul with optional LN prologue / bias / activation / residual."""
    M, K = x.shape
    K2, N = w.shape
    assert K == K2
    has_ln = ln_gamma is not None
    has_bias = b is not None
    has_res = residual is not None

    tm_ = _pick_tile(M, tm, (16, 8))
    tn_ = _pick_tile(N, tn, (256, 128))
    tk_ = K if has_ln else _pick_tile(K, tk, (256, 128))   # LN needs the full row
    grid = (M // tm_, N // tn_, K // tk_)
    multi_k = grid[2] > 1
    assert not (has_ln and multi_k)

    in_specs = [pl.BlockSpec((tm_, tk_), lambda i, j, k: (i, k)),
                pl.BlockSpec((tk_, tn_), lambda i, j, k: (k, j))]
    args = [x, w]
    if has_bias:
        in_specs.append(pl.BlockSpec((1, tn_), lambda i, j, k: (0, j)))
        args.append(b.reshape(1, N).astype(jnp.float32))
    if has_ln:
        in_specs.append(pl.BlockSpec((1, tk_), lambda i, j, k: (0, k)))
        args.append(ln_gamma.reshape(1, K).astype(jnp.float32))
        in_specs.append(pl.BlockSpec((1, tk_), lambda i, j, k: (0, k)))
        args.append(ln_beta.reshape(1, K).astype(jnp.float32))
    if has_res:
        in_specs.append(pl.BlockSpec((tm_, tn_), lambda i, j, k: (i, j)))
        args.append(residual)

    scratch = []
    if multi_k:
        scratch.append(pltpu.VMEM((tm_, tn_), jnp.float32))
    if has_ln:
        scratch.append(pltpu.VMEM((tm_, K), w.dtype))       # cached LN(x), bf16

    kernel = functools.partial(
        _fused_linear_kernel, has_bias=has_bias, has_ln=has_ln, has_res=has_res,
        activation=activation, ln_eps=ln_eps, multi_k=multi_k)

    # The LN cache is filled at j == 0 and reused for j > 0, so the N axis must
    # stay sequential when LN is fused; megacore then only splits the row axis.
    dims = ("parallel", "arbitrary" if has_ln else "parallel", "arbitrary")

    return pl.pallas_call(
        kernel,
        out_shape=jax.ShapeDtypeStruct((M, N), out_dtype),
        grid=grid,
        in_specs=in_specs,
        out_specs=pl.BlockSpec((tm_, tn_), lambda i, j, k: (i, j)),
        scratch_shapes=scratch,
        compiler_params=pltpu.CompilerParams(
            dimension_semantics=dims, vmem_limit_bytes=_VMEM_LIMIT),
    )(*args)


# ----------------------------------------------------------------------------
# Flash-style attention: grid (B, H, Q blocks, KV blocks), online softmax
# ----------------------------------------------------------------------------
def _flash_attn_kernel(q_ref, k_ref, v_ref, bias_ref, o_ref,
                       m_sc, l_sc, acc_sc, *, scale):
    kv = pl.program_id(3)

    @pl.when(kv == 0)
    def _init():
        m_sc[...] = jnp.full_like(m_sc, -1e30)
        l_sc[...] = jnp.zeros_like(l_sc)
        acc_sc[...] = jnp.zeros_like(acc_sc)

    q = q_ref[0, 0]                      # (tq,  d_k)  bf16
    k = k_ref[0, 0]                      # (tkv, d_k)  bf16
    v = v_ref[0, 0]                      # (tkv, d_k)  bf16

    # q @ k^T via dot_general contracting the last dims (no explicit transpose).
    s = jax.lax.dot_general(q, k, (((1,), (1,)), ((), ())),
                            preferred_element_type=jnp.float32) * scale
    s = s + bias_ref[0]                  # (1, tkv) per-key bias, broadcast over tq

    m_prev = m_sc[...]
    m_new = jnp.maximum(m_prev, jnp.max(s, axis=-1, keepdims=True))
    alpha = jnp.exp(m_prev - m_new)
    p = jnp.exp(s - m_new)
    l_sc[...] = alpha * l_sc[...] + jnp.sum(p, axis=-1, keepdims=True)
    acc_sc[...] = alpha * acc_sc[...] + jnp.dot(
        p.astype(v.dtype), v, preferred_element_type=jnp.float32)
    m_sc[...] = m_new

    @pl.when(kv == pl.num_programs(3) - 1)
    def _flush():
        o_ref[0, 0] = (acc_sc[...] *
                       pl.reciprocal(l_sc[...], approx=True)).astype(o_ref.dtype)


def flash_attention(q, k, v, key_bias, *, scale, tq=256, tkv=512):
    """q, k, v: (B, H, S, Dk).  key_bias: (B, 1, S) additive f32 bias (0 / -1e9)
    derived from a key-padding mask; broadcast over heads and query rows inside
    the kernel so it is fetched once per (batch, kv block), not once per head."""
    B, H, S, Dk = q.shape
    tq_ = _pick_tile(S, tq, (256, 128, 8))
    tkv_ = _pick_tile(S, tkv, (256, 128, 8))
    grid = (B, H, S // tq_, S // tkv_)
    kernel = functools.partial(_flash_attn_kernel, scale=scale)
    return pl.pallas_call(
        kernel,
        out_shape=jax.ShapeDtypeStruct((B, H, S, Dk), q.dtype),
        grid=grid,
        in_specs=[
            pl.BlockSpec((1, 1, tq_, Dk), lambda b, h, qb, kv: (b, h, qb, 0)),
            pl.BlockSpec((1, 1, tkv_, Dk), lambda b, h, qb, kv: (b, h, kv, 0)),
            pl.BlockSpec((1, 1, tkv_, Dk), lambda b, h, qb, kv: (b, h, kv, 0)),
            pl.BlockSpec((1, 1, tkv_), lambda b, h, qb, kv: (b, 0, kv)),
        ],
        out_specs=pl.BlockSpec((1, 1, tq_, Dk), lambda b, h, qb, kv: (b, h, qb, 0)),
        scratch_shapes=[pltpu.VMEM((tq_, 1), jnp.float32),
                        pltpu.VMEM((tq_, 1), jnp.float32),
                        pltpu.VMEM((tq_, Dk), jnp.float32)],
        compiler_params=pltpu.CompilerParams(
            dimension_semantics=("parallel", "parallel", "parallel", "arbitrary"),
            vmem_limit_bytes=_VMEM_LIMIT),
    )(q, k, v, key_bias)


# ----------------------------------------------------------------------------
# Model glue (plain JAX: reshapes / transposes / parameter setup)
# ----------------------------------------------------------------------------
def multi_head_attention(lp, x_flat, key_bias, B, S, heads):
    D = lp["fc_w"].shape[0]
    d_k = D // heads
    # LN1 fused as prologue of the fused Q|K|V projection (one matmul).
    qkv = fused_linear(x_flat, lp["w_qkv"], None,
                       ln_gamma=lp["ln1_g"], ln_beta=lp["ln1_b"],
                       out_dtype=jnp.bfloat16)                     # (B*S, 3D)
    qkv = qkv.reshape(B, S, 3, heads, d_k)
    q = qkv[:, :, 0].transpose(0, 2, 1, 3)                          # (B,H,S,d_k)
    k = qkv[:, :, 1].transpose(0, 2, 1, 3)
    v = qkv[:, :, 2].transpose(0, 2, 1, 3)
    o = flash_attention(q, k, v, key_bias, scale=1.0 / math.sqrt(d_k))
    concat = o.transpose(0, 2, 1, 3).reshape(B * S, D)
    # Output projection with the residual add fused as an epilogue (f32 acc).
    return fused_linear(concat, lp["fc_w"], lp["fc_b"], residual=x_flat,
                        out_dtype=jnp.bfloat16)


def encoder_layer(lp, x_flat, key_bias, B, S, heads):
    """Pre-norm encoder layer (norm_first=True, custom_attn=True)."""
    x_flat = multi_head_attention(lp, x_flat, key_bias, B, S, heads)
    # LN2 fused as prologue of FFN1; exact-erf GELU epilogue; bf16 activations.
    h = fused_linear(x_flat, lp["ff_w1"], lp["ff_b1"], activation="gelu",
                     ln_gamma=lp["ln2_g"], ln_beta=lp["ln2_b"],
                     out_dtype=jnp.bfloat16)
    # FFN2 with residual add fused as an epilogue.
    x_flat = fused_linear(h, lp["ff_w2"], lp["ff_b2"], residual=x_flat,
                          out_dtype=jnp.bfloat16)
    return x_flat


def bert_forward(params, src, key_mask, pe_table, *, heads, block_size):
    """mod='rec', multclass=False path of BERT.forward (eval semantics).
    key_mask: (B, S) key-padding mask (1 = attend, 0 = masked)."""
    B, S, _ = src.shape
    D = params["fc3_w"].shape[1]

    # Encoder input projection: FC1 -> relu -> FC2 -> relu -> FC3
    xf = src.reshape(B * S, -1).astype(jnp.float32)
    xf = fused_linear(xf, params["fc1_w"], params["fc1_b"], activation="relu",
                      out_dtype=jnp.bfloat16)
    xf = fused_linear(xf, params["fc2_w"], params["fc2_b"], activation="relu",
                      out_dtype=jnp.bfloat16)
    x = fused_linear(xf, params["fc3_w"], params["fc3_b"],
                     out_dtype=jnp.float32)                         # (B*S, D)

    # positional encoding (additive sinusoidal table); residual stream -> bf16
    x = (x.reshape(B, S, D) + pe_table[None, :, :]).astype(jnp.bfloat16)
    x = x.reshape(B * S, D)

    # per-key additive bias (0 / -1e9), fetched once per (batch, kv block)
    key_bias = jnp.where(key_mask == 0, -1000000000.0, 0.0)
    key_bias = key_bias.astype(jnp.float32).reshape(B, 1, S)

    for lp in params["layers"]:
        x = encoder_layer(lp, x, key_bias, B, S, heads)

    # Head: final LayerNorm fused as prologue; softmax over (class0, class1)
    # pairs == sigmoid of the logit difference, folded into the weights.
    p0 = fused_linear(x, params["out_wd"], params["out_bd"],
                      ln_gamma=params["norm_g"], ln_beta=params["norm_b"],
                      activation="sigmoid", out_dtype=jnp.float32)  # (B*S, bs)

    bs = block_size
    p0 = p0.reshape(B, S * bs)
    out = jnp.stack([p0, 1.0 - p0], axis=-1)                        # (B, S*bs, 2)
    return out


# ----------------------------------------------------------------------------
# Deterministic parameter init (weights bf16, biases / LN params f32)
# ----------------------------------------------------------------------------
def init_params(key, input_size, d_model, n_layers, block_size):
    keys = jax.random.split(key, 4 + 4 * n_layers)
    ki = iter(keys)
    scale = 0.05

    def w(shape):
        return (scale * jax.random.normal(next(ki), shape, dtype=jnp.float32)
                ).astype(jnp.bfloat16)

    d3 = 3 * d_model
    out_w = scale * jax.random.normal(next(ki), (d_model, 2 * block_size),
                                      dtype=jnp.float32)
    out_b = jnp.zeros((2 * block_size,), jnp.float32)
    params = {
        "fc1_w": w((input_size, d3)), "fc1_b": jnp.zeros((d3,), jnp.float32),
        "fc2_w": w((d3, d3)),          "fc2_b": jnp.zeros((d3,), jnp.float32),
        "fc3_w": w((d3, d_model)),     "fc3_b": jnp.zeros((d_model,), jnp.float32),
        "norm_g": jnp.ones((d_model,), jnp.float32),
        "norm_b": jnp.zeros((d_model,), jnp.float32),
        # Pair-softmax folded into the head:
        #   softmax([a, b]) == [sigmoid(a - b), 1 - sigmoid(a - b)]
        "out_wd": (out_w[:, 0::2] - out_w[:, 1::2]).astype(jnp.bfloat16),
        "out_bd": (out_b[0::2] - out_b[1::2]).astype(jnp.float32),
        "layers": [],
    }
    for _ in range(n_layers):
        params["layers"].append({
            "ln1_g": jnp.ones((d_model,), jnp.float32),
            "ln1_b": jnp.zeros((d_model,), jnp.float32),
            "ln2_g": jnp.ones((d_model,), jnp.float32),
            "ln2_b": jnp.zeros((d_model,), jnp.float32),
            # fused Q|K|V projection weight (bias=False in the torch module)
            "w_qkv": w((d_model, 3 * d_model)),
            "fc_w": w((d_model, d_model)),
            "fc_b": jnp.zeros((d_model,), jnp.float32),
            "ff_w1": w((d_model, 4 * d_model)),
            "ff_b1": jnp.zeros((4 * d_model,), jnp.float32),
            "ff_w2": w((4 * d_model, d_model)),
            "ff_b2": jnp.zeros((d_model,), jnp.float32),
        })
    return params


def make_pe_table(seq_len, d_model):
    pos = jnp.arange(seq_len, dtype=jnp.float32)[:, None]
    i = jnp.arange(0, d_model, 2, dtype=jnp.float32)[None, :]
    angle = pos / jnp.power(10000.0, i / d_model)
    pe = jnp.zeros((seq_len, d_model), jnp.float32)
    pe = pe.at[:, 0::2].set(jnp.sin(angle))
    pe = pe.at[:, 1::2].set(jnp.cos(angle))
    return pe


# ----------------------------------------------------------------------------
if __name__ == "__main__":
    # mod='rec', multclass=False configuration (small test shapes)
    B, S = 2, 8
    input_size = 8
    d_model = 32
    n_layers = 2
    heads = 4
    block_size = 4

    key = jax.random.PRNGKey(0)
    k_param, k_src = jax.random.split(key)
    params = init_params(k_param, input_size, d_model, n_layers, block_size)

    src = jax.random.normal(k_src, (B, S, input_size), dtype=jnp.float32)
    # key-padding mask (B, S): 1 = attend, 0 = masked (last key masked as a test)
    key_mask = jnp.ones((B, S), jnp.float32).at[:, -1].set(0.0)
    pe_table = make_pe_table(S, d_model)

    out = bert_forward(params, src, key_mask, pe_table,
                       heads=heads, block_size=block_size)
    out = jax.block_until_ready(out)

    assert out.shape == (B, S * block_size, 2), out.shape
    # softmax rows must sum to 1 and be finite
    assert bool(jnp.allclose(jnp.sum(out, axis=-1), 1.0, atol=1e-5))
    assert bool(jnp.all(jnp.isfinite(out)))
    print("KERNEL_OK")
</pallas_src>

<mosaic_0001>
module attributes {stable_mosaic.version = 11 : i64} {
  func.func @_fused_linear_kernel(%arg0: i32, %arg1: i32, %arg2: i32, %arg3: memref<16x8xf32, #tpu.memory_space<vmem>>, %arg4: memref<8x96xbf16, #tpu.memory_space<vmem>>, %arg5: memref<1x96xf32, #tpu.memory_space<vmem>>, %arg6: memref<16x96xbf16, #tpu.memory_space<vmem>>) attributes {dimension_semantics = [#tpu.dimension_semantics<parallel>, #tpu.dimension_semantics<parallel>, #tpu.dimension_semantics<arbitrary>], iteration_bounds = array<i64: 1, 1, 1>, scalar_prefetch = 0 : i64, scratch_operands = 0 : i64, tpu.core_type = #tpu.core_type<tc>, window_params = [{transform_indices = @transform_0, window_bounds = array<i64: 16, 8>}, {transform_indices = @transform_1, window_bounds = array<i64: 8, 96>}, {transform_indices = @transform_2, window_bounds = array<i64: 1, 96>}, {transform_indices = @transform_3, window_bounds = array<i64: 16, 96>}]} {
    %c0 = arith.constant 0 : index
    %c0_0 = arith.constant 0 : index
    %0 = vector.load %arg3[%c0, %c0_0] : memref<16x8xf32, #tpu.memory_space<vmem>>, vector<16x8xf32>
    %1 = arith.truncf %0 : vector<16x8xf32> to vector<16x8xbf16>
    %c0_1 = arith.constant 0 : index
    %c0_2 = arith.constant 0 : index
    %2 = vector.load %arg4[%c0_1, %c0_2] : memref<8x96xbf16, #tpu.memory_space<vmem>>, vector<8x96xbf16>
    %cst = arith.constant dense<0.000000e+00> : vector<16x96xf32>
    %3 = tpu.matmul %1, %2, %cst {dimension_numbers = #tpu.dot_dimension_numbers<[1], [0], [0], [1], [0, 0, 1, 1], [], []>} : vector<16x8xbf16>, vector<8x96xbf16>, vector<16x96xf32> -> vector<16x96xf32>
    %c0_3 = arith.constant 0 : index
    %c0_4 = arith.constant 0 : index
    %4 = vector.load %arg5[%c0_3, %c0_4] : memref<1x96xf32, #tpu.memory_space<vmem>>, vector<1x96xf32>
    %5 = vector.broadcast %4 : vector<1x96xf32> to vector<16x96xf32>
    %6 = arith.addf %3, %5 : vector<16x96xf32>
    %cst_5 = arith.constant 0.000000e+00 : f32
    %7 = vector.broadcast %cst_5 : f32 to vector<16x96xf32>
    %8 = arith.maximumf %6, %7 : vector<16x96xf32>
    %9 = arith.truncf %8 : vector<16x96xf32> to vector<16x96xbf16>
    %c0_6 = arith.constant 0 : index
    %c0_7 = arith.constant 0 : index
    %10 = vector.load %arg6[%c0_6, %c0_7] : memref<16x96xbf16, #tpu.memory_space<vmem>>, vector<16x96xbf16>
    tpu.vector_store %arg6[%c0_6, %c0_7], %9 {strides = array<i32>} : memref<16x96xbf16, #tpu.memory_space<vmem>>, vector<16x96xbf16>,
    return
  }
  func.func @transform_0(%arg0: i32, %arg1: i32, %arg2: i32) -> (i32, i32) {
    %c0_i32 = arith.constant 0 : i32
    return %arg0, %arg2 : i32, i32
  }
  func.func @transform_1(%arg0: i32, %arg1: i32, %arg2: i32) -> (i32, i32) {
    %c0_i32 = arith.constant 0 : i32
    return %arg2, %arg1 : i32, i32
  }
  func.func @transform_2(%arg0: i32, %arg1: i32, %arg2: i32) -> (i32, i32) {
    %c0_i32 = arith.constant 0 : i32
    %c0_i32_0 = arith.constant 0 : i32
    return %c0_i32, %arg1 : i32, i32
  }
  func.func @transform_3(%arg0: i32, %arg1: i32, %arg2: i32) -> (i32, i32) {
    %c0_i32 = arith.constant 0 : i32
    return %arg0, %arg1 : i32, i32
  }
}

</mosaic_0001>

<bundles_post_ra>
// kernel: tpu_custom_call.1
= control target key start
LH: loop header
LB: loop body
LE: loop exit
PB: predicated region body
PF: predicated region fallthrough
CT: control target
= control target key end

     0   :  { %vm31_vm0 = vcmask 1043456   ;;  %v146_v2 = vmov 0.0   ;;  %vm147_vm1 = vmmov 0   ;;  %vm27_vm2 = vcmask 64512   ;;  %s186_s0 = inlined_call_operand.vmem [shape: f32[16,8], index: 0, kind: input, shape index: {}]   ;;  %s187_s1 = inlined_call_operand.vmem [shape: bf16[8,96], index: 1, kind: input, shape index: {}]   ;;  %s188_s2 = inlined_call_operand.vmem [shape: f32[1,96], index: 2, kind: input, shape index: {}]   ;;  %s189_s3 = inlined_call_operand.hbm [shape: bf16[16,96], index: 3, kind: output, shape index: {}]  }
   0x1   :  { %v19_v0 = vld [vmem:[%s187_s1] sm:$0xf]  ;;  %113 = vmatprep.subr.bf16.mxu0 %v146_v2  ;;  %115 = vmatprep.mubr.msk.bf16.mxu0 %vm147_vm1, %v146_v2  ;;  %v17_v4 = vld [vmem:[%s186_s0 + $0x8] sm:$0xff] }
   0x2   :  { %v16_v1 = vld [vmem:[%s186_s0] sm:$0xff]  ;;  %v33_v3 = vsel %vm31_vm0, %v19_v0, 0 }
   0x3   :  { %114 = vmatpush3.bf16.msra.mxu0 %v33_v3  ;;  %v18_v5 = vpack.c.bf16 %v17_v4, %v16_v1 }
   0x4   :  { %8 = vsyncpa [#allocation3], 0  ;;  %v105_v6 = vld [vmem:[%s188_s2] ss:$0 sm:$0xff]  ;;  %vm86_vm3 = vcmask 781312   ;;  %s148_s19 = smov [#allocation2]  }
   0x5   :  { %s94_s20 = sshll.u32 %s148_s19, 4  ;;  %s95_s20 = int_to_ptr.vmem [resolvable:$true] %s94_s20 }
   0x6   :  { %116 = vmatmul.mubr.msk.bf16.vlgmr.msra.gmra.mxu0 %vm27_vm2, %v18_v5  ;;  %s124_s0 = scalar_lea.vmem %s95_s20, 128  ;;  %p129_p1 = scmp.lt.s32.totalorder %s95_s20, %s95_s20 }
   0x7   :  { %p125_p0 = scmp.ne.s32.totalorder %s95_s20, %s124_s0  ;;  %p130_p2 = scmp.lt.s32.totalorder %s124_s0, %s124_s0 }
   0x9   :  { %p131_p3 = por %p130_p2, %p129_p1 }
   0xb   :  { %p132_p4 = pnand %p131_p3, %p125_p0 }
  0xc6   :  { %v69_v7 = vpop.f32.mrf.mxu0 }
  0xc7   :  { %v70_v8 = vadd.f32 %v105_v6, %v69_v7 }
  0xc8   :  { %v117_v9 = vpop.f32.mrf.mxu0 }
  0xc9   :  { %v76_v10 = vmax.f32 %v70_v8, 0.0 }
  0xca   :  { %v72_v11 = vpop.f32.mrf.mxu0 }
  0xcb   :  { %v109_v12 = vpack.c.bf16 %v76_v10, %v76_v10  ;;  %v73_v13 = vadd.f32 %v105_v6, %v72_v11 }
  0xcc   :  { %v118_v14 = vpop.f32.mrf.mxu0 }
  0xcd   :  { %87 = vst.msk [vmem:[#allocation2] sm:$0xf] %vm86_vm3, %v109_v12  ;;  %v77_v15 = vmax.f32 %v73_v13, 0.0 }
  0xcf   :  { %v110_v16 = vpack.c.bf16 %v77_v15, %v77_v15 }
  0xd1   :  { %88 = vst.msk [vmem:[#allocation2 + $0x4] sm:$0xf] %vm86_vm3, %v110_v16 }
  0xd2   :  { %135 = shalt.err (!%p132_p4)
}
  0xd3   :  { %s149_s2 = smov 64   ;;  %s150_s21 = smov 4  }
  0xd4   :  { %100 = dma.vmem_to_hbm [thread:$0]  %s95_s20, 128, %s189_s3, [#allocation3], %s149_s2, %s149_s2, %s150_s21  }
  0xd5   :  { %144 = dma.done.wait [#allocation3], 128  }
  0xd6   :  { %145 = vsyncadd [#allocation3], 4294967168 }
  0xd7   :  { %104 = vsyncpa [#allocation3], 1 }

</bundles_post_ra>
